<compile_context>
chip_gen: v7x
topology: tpu7x:2x2x1
jax: 0.10.0
libtpu: 0.0.40
codegen_flags: <defaults>
</compile_context>

<pallas_src>
import functools

import jax
import jax.numpy as jnp
from jax.experimental import pallas as pl
from jax.experimental.pallas import tpu as pltpu


def _round_up(x: int, m: int) -> int:
    return ((x + m - 1) // m) * m


def _device_kind() -> str:
    try:
        return jax.devices()[0].device_kind.lower()
    except Exception:
        return ""


def _default_block_bytes(kind: str) -> int:
    # v7x: ~3.2 TB/s HBM -> the ~0.35us/step overhead is ~25% of a 2 MiB step;
    # 4 MiB blocks (2 in-bufs + 2 out-bufs = 16 MiB live) cut it to ~12% and
    # stay under the 32 MiB scoped-VMEM default.  v5e/v6e: 2 MiB is already at
    # ~roofline and keeps live buffers at 8 MiB (under v5e's 16 MiB default).
    if "v7" in kind:
        return 4 * 1024 * 1024
    return 2 * 1024 * 1024


def _compute_dtype(dtype, kind: str):
    # v6e/v7x have native bf16 VPU/EUP; v5e does not -> upcast only there.
    if dtype == jnp.bfloat16 and "v5" not in kind:
        return jnp.bfloat16
    return jnp.float32


def _swish_kernel(x_ref, o_ref, *, compute_dtype):
    x = x_ref[...].astype(compute_dtype)
    o_ref[...] = (x * jax.nn.sigmoid(x)).astype(o_ref.dtype)


def _swish_jnp(x, compute_dtype):
    xf = x.astype(compute_dtype)
    return (xf * jax.nn.sigmoid(xf)).astype(x.dtype)


def _swish_2d(x2d, tm: int, lanes: int, compute_dtype, donate: bool):
    rows = x2d.shape[0]
    n = x2d.size
    itemsize = jnp.dtype(x2d.dtype).itemsize
    return pl.pallas_call(
        functools.partial(_swish_kernel, compute_dtype=compute_dtype),
        out_shape=jax.ShapeDtypeStruct(x2d.shape, x2d.dtype),
        grid_spec=pltpu.PrefetchScalarGridSpec(
            num_scalar_prefetch=0,
            # cdiv grid: the ragged final block is padded/masked by Pallas;
            # no reduction in the kernel, so garbage pad rows are harmless.
            grid=(pl.cdiv(rows, tm),),
            in_specs=[pl.BlockSpec((tm, lanes), lambda i: (i, 0))],
            out_specs=pl.BlockSpec((tm, lanes), lambda i: (i, 0)),
        ),
        compiler_params=pltpu.CompilerParams(
            dimension_semantics=("parallel",),
        ),
        cost_estimate=pl.CostEstimate(
            flops=3 * n,
            transcendentals=n,
            bytes_accessed=2 * n * itemsize,
        ),
        input_output_aliases=({0: 0} if donate else {}),
    )(x2d)


def _pick_tm(rows: int, lanes: int, itemsize: int, sub: int, block_bytes: int) -> int:
    if rows < sub:
        return rows                      # tiny: single full-extent block (allowed)
    tm_cap = max(sub, ((block_bytes // (lanes * itemsize)) // sub) * sub)
    # Aim for >= ~4 grid steps (>= 2x TC count on v7x) so the DMA pipeline and
    # megacore sharding have work; tiny arrays naturally collapse to 1 step.
    min_steps = 4
    tm_for_steps = max(sub, _round_up(pl.cdiv(rows, min_steps), sub))
    return min(tm_cap, tm_for_steps)


def swish(x: jax.Array, *, block_bytes: int | None = None, donate: bool = False) -> jax.Array:
    """Elementwise swish (x * sigmoid(x)). Any shape; hot path runs in Pallas."""
    orig_shape = x.shape
    total = x.size
    if total == 0:
        return x

    kind = _device_kind()
    dtype = x.dtype
    itemsize = jnp.dtype(dtype).itemsize
    compute_dtype = _compute_dtype(dtype, kind)
    if block_bytes is None:
        block_bytes = _default_block_bytes(kind)

    # dtype-aware sublane granularity: 8 rows f32, 16 bf16, 32 int8/fp8.
    sub = max(8, 32 // itemsize)

    # ---- lane-dense fast path: widest lane count that divides the total ----
    lanes = None
    for cand in (1024, 512, 256, 128):
        if total % cand == 0 and total // cand >= sub:
            lanes = cand
            break
    if lanes is None:
        for cand in (1024, 512, 256, 128):
            if total % cand == 0:
                lanes = cand
                break

    if lanes is not None:
        rows = total // lanes
        tm = _pick_tm(rows, lanes, itemsize, sub, block_bytes)
        out2d = _swish_2d(x.reshape(rows, lanes), tm, lanes, compute_dtype, donate)
        return out2d.reshape(orig_shape)

    # ---- ragged total (total % 128 != 0, rare): kernel on the 128-divisible
    #      prefix, plain jnp on the <128-element tail. No whole-array pad. ----
    lanes = 128
    prefix = (total // lanes) * lanes
    x_flat = x.reshape(-1)
    if prefix == 0:
        return _swish_jnp(x_flat, compute_dtype).reshape(orig_shape)
    rows = prefix // lanes
    tm = _pick_tm(rows, lanes, itemsize, sub, block_bytes)
    head = _swish_2d(x_flat[:prefix].reshape(rows, lanes), tm, lanes, compute_dtype, False)
    tail = _swish_jnp(x_flat[prefix:], compute_dtype)
    # TODO(synk): the concatenate re-copies the prefix once; acceptable for this rare path.
    return jnp.concatenate([head.reshape(-1), tail]).reshape(orig_shape)


if __name__ == "__main__":
    key = jax.random.PRNGKey(0)

    # NCHW input consistent with EfficientNet conv activations.
    x = jax.random.normal(key, (2, 4, 16, 16), dtype=jnp.float32)
    y = swish(x)
    jax.block_until_ready(y)
    y_ref = x * jax.nn.sigmoid(x)
    assert y.shape == x.shape and y.dtype == x.dtype
    assert jnp.allclose(y, y_ref, atol=1e-6, rtol=1e-6)

    # bf16 path (native bf16 compute on v6e/v7x, f32 upcast on v5e).
    xb = jax.random.normal(key, (2, 4, 16, 16), dtype=jnp.float32).astype(jnp.bfloat16)
    yb = swish(xb)
    jax.block_until_ready(yb)
    xb32 = xb.astype(jnp.float32)
    yb_ref = (xb32 * jax.nn.sigmoid(xb32)).astype(jnp.bfloat16)
    assert yb.shape == xb.shape and yb.dtype == xb.dtype
    assert jnp.allclose(yb.astype(jnp.float32), yb_ref.astype(jnp.float32),
                        atol=2e-2, rtol=2e-2)

    # ragged-total path (385 elements = 3*128 prefix + 1-element tail).
    xr = jax.random.normal(key, (5, 7, 11), dtype=jnp.float32)
    yr = swish(xr)
    jax.block_until_ready(yr)
    yr_ref = xr * jax.nn.sigmoid(xr)
    assert yr.shape == xr.shape and yr.dtype == xr.dtype
    assert jnp.allclose(yr, yr_ref, atol=1e-6, rtol=1e-6)

    print("KERNEL_OK")
</pallas_src>

<mosaic_0001>
module attributes {stable_mosaic.version = 11 : i64} {
  func.func @_swish_kernel(%arg0: i32, %arg1: memref<8x256xf32, #tpu.memory_space<vmem>>, %arg2: memref<8x256xf32, #tpu.memory_space<vmem>>) attributes {dimension_semantics = [#tpu.dimension_semantics<parallel>], iteration_bounds = array<i64: 1>, scalar_prefetch = 0 : i64, scratch_operands = 0 : i64, tpu.core_type = #tpu.core_type<tc>, window_params = [{transform_indices = @transform_0, window_bounds = array<i64: 8, 256>}, {transform_indices = @transform_1, window_bounds = array<i64: 8, 256>}]} {
    %c0 = arith.constant 0 : index
    %c0_0 = arith.constant 0 : index
    %0 = vector.load %arg1[%c0, %c0_0] : memref<8x256xf32, #tpu.memory_space<vmem>>, vector<8x256xf32>
    %1 = arith.negf %0 : vector<8x256xf32>
    %2 = math.exp %1 : vector<8x256xf32>
    %cst = arith.constant 1.000000e+00 : f32
    %3 = vector.broadcast %cst : f32 to vector<8x256xf32>
    %4 = arith.addf %3, %2 : vector<8x256xf32>
    %5 = arith.divf %3, %4 : vector<8x256xf32>
    %6 = arith.mulf %0, %5 : vector<8x256xf32>
    %c0_1 = arith.constant 0 : index
    %c0_2 = arith.constant 0 : index
    %7 = vector.load %arg2[%c0_1, %c0_2] : memref<8x256xf32, #tpu.memory_space<vmem>>, vector<8x256xf32>
    tpu.vector_store %arg2[%c0_1, %c0_2], %6 {strides = array<i32>} : memref<8x256xf32, #tpu.memory_space<vmem>>, vector<8x256xf32>,
    return
  }
  func.func @transform_0(%arg0: i32) -> (i32, i32) {
    %c0_i32 = arith.constant 0 : i32
    %c0_i32_0 = arith.constant 0 : i32
    return %arg0, %c0_i32 : i32, i32
  }
  func.func @transform_1(%arg0: i32) -> (i32, i32) {
    %c0_i32 = arith.constant 0 : i32
    %c0_i32_0 = arith.constant 0 : i32
    return %arg0, %c0_i32 : i32, i32
  }
}

</mosaic_0001>

<bundles_post_ra>
// kernel: tpu_custom_call.1
= control target key start
LH: loop header
LB: loop body
LE: loop exit
PB: predicated region body
PF: predicated region fallthrough
CT: control target
= control target key end

     0   :  { %6 = vsyncpa [#allocation3], 0  ;;  %s150_s0 = inlined_call_operand.hbm [shape: f32[8,256], index: 0, kind: input, shape index: {}]   ;;  %s151_s1 = inlined_call_operand.hbm [shape: f32[8,256], index: 1, kind: output, shape index: {}]  }
   0x1   :  { %7 = vsyncpa [#allocation4], 0  ;;  %s114_s6 = smov [#allocation2]   ;;  %s66_s10 = scalar_lea.hbm %s150_s0, 256 }
   0x2   :  { %s14_s7 = sshll.u32 %s114_s6, 4  ;;  %p67_p0 = scmp.ne.s32.totalorder %s150_s0, %s66_s10  ;;  %s15_s7 = int_to_ptr.vmem [resolvable:$true] %s14_s7 }
   0x3   :  { %p70_p1 = scmp.lt.u32.totalorder %s66_s10, %s150_s0 }
   0x5   :  { %p72_p2 = pnand %p70_p1, %p67_p0 }
   0x7   :  { %75 = shalt.err (!%p72_p2)
}
   0x8   :  { %s76_s15 = scalar_lea.vmem %s15_s7, 256  ;;  %p81_p4 = scmp.lt.s32.totalorder %s15_s7, %s15_s7 }
   0x9   :  { %p77_p3 = scmp.ne.s32.totalorder %s15_s7, %s76_s15  ;;  %p82_p5 = scmp.lt.s32.totalorder %s76_s15, %s76_s15 }
   0xb   :  { %p83_p6 = por %p82_p5, %p81_p4 }
   0xd   :  { %p84_p7 = pnand %p83_p6, %p77_p3 }
   0xf   :  { %87 = shalt.err (!%p84_p7)
}
  0x10   :  { %17 = dma.hbm_to_vmem [thread:$0]  %s150_s0, 256, %s15_s7, [#allocation3]  }
  0x11   :  { %110 = dma.done.wait [#allocation3], 256  }
  0x12   :  { %111 = vsyncadd [#allocation3], 4294967040  ;;  %v21_v0 = vld [vmem:[#allocation2] sm:$0xff]  ;;  %v22_v1 = vld [vmem:[#allocation2 + $0x8] sm:$0xff]  ;;  %s115_s18 = smov [#allocation5]  }
  0x13   :  { %v54_v2 = vmul.f32 -1.442695, %v21_v0  ;;  %v55_v3 = vmul.f32 -1.442695, %v22_v1  ;;  %s45_s19 = sshll.u32 %s115_s18, 4  ;;  %s46_s19 = int_to_ptr.vmem [resolvable:$true] %s45_s19 }
  0x14   :  { %s88_s0 = scalar_lea.vmem %s46_s19, 256  ;;  %p93_p9 = scmp.lt.s32.totalorder %s46_s19, %s46_s19 }
  0x15   :  { %58 = vpow2.f32 %v54_v2  ;;  %p89_p8 = scmp.ne.s32.totalorder %s46_s19, %s88_s0  ;;  %p94_p10 = scmp.lt.s32.totalorder %s88_s0, %s88_s0 }
  0x16   :  { %60 = vpow2.f32 %v55_v3 }
  0x17   :  { %p95_p11 = por %p94_p10, %p93_p9 }
  0x19   :  { %p96_p12 = pnand %p95_p11, %p89_p8 }
  0x1f   :  { %v59_v4 = vpop.eup %58 }
  0x20   :  { %v61_v5 = vpop.eup %60  ;;  %v29_v6 = vadd.f32 1.0, %v59_v4 }
  0x21   :  { %v30_v7 = vadd.f32 1.0, %v61_v5 }
  0x22   :  { %62 = vrcp.f32 %v29_v6 }
  0x23   :  { %64 = vrcp.f32 %v30_v7 }
  0x2c   :  { %v63_v8 = vpop.eup %62 }
  0x2d   :  { %v65_v9 = vpop.eup %64  ;;  %v35_v10 = vmul.f32 %v63_v8, %v21_v0 }
  0x2e   :  { %v36_v11 = vmul.f32 %v65_v9, %v22_v1 }
  0x2f   :  { %37 = vst [vmem:[#allocation5] sm:$0xff] %v35_v10 }
  0x30   :  { %38 = vst [vmem:[#allocation5 + $0x8] sm:$0xff] %v36_v11 }
  0x31   :  { %99 = shalt.err (!%p96_p12)
}
  0x32   :  { %s100_s22 = scalar_lea.hbm %s151_s1, 256 }
  0x33   :  { %p101_p13 = scmp.ne.s32.totalorder %s151_s1, %s100_s22  ;;  %p104_p0 = scmp.lt.u32.totalorder %s100_s22, %s151_s1 }
  0x35   :  { %p106_p1 = pnand %p104_p0, %p101_p13 }
  0x37   :  { %109 = shalt.err (!%p106_p1)
}
  0x38   :  { %48 = dma.vmem_to_hbm [thread:$0]  %s46_s19, 256, %s151_s1, [#allocation4]  }
  0x39   :  { %112 = dma.done.wait [#allocation4], 256  }
  0x3a   :  { %113 = vsyncadd [#allocation4], 4294967040 }
  0x3b   :  { %52 = vsyncpa [#allocation3], 1 }
  0x3c   :  { %53 = vsyncpa [#allocation4], 1 }

</bundles_post_ra>
